<compile_context>
chip_gen: v7x
topology: tpu7x:2x2x1
jax: 0.10.0
libtpu: 0.0.40
codegen_flags: <defaults>
</compile_context>

<pallas_src>
import functools

import jax
import jax.numpy as jnp
from jax.experimental import pallas as pl
from jax.experimental.pallas import tpu as pltpu

_SUBLANE = 8  # f32 sublane width (second-to-last dim tiling granule)


def _round_up(n, m):
    return ((n + m - 1) // m) * m


def _net_kernel(x_ref, w1_ref, b1_ref, w2_ref, b2_ref, o_ref):
    # Two tiny contractions (K=n_states, then K=hidden) + bias + ReLU.
    # MXU shape is irrelevant here (kernel is DMA/launch bound); jnp.dot is
    # the simple right call.
    x = x_ref[...]                                        # (tb, n_states)
    h = jnp.dot(x, w1_ref[...],
                preferred_element_type=jnp.float32)       # (tb, hidden)
    h = jnp.maximum(h + b1_ref[...], 0.0)                 # bias + ReLU
    out = jnp.dot(h, w2_ref[...],
                  preferred_element_type=jnp.float32)     # (tb, n_actions)
    o_ref[...] = (out + b2_ref[...]).astype(o_ref.dtype)


def _pick_tb(batch, block_b):
    """Batch tile: full-extent for tiny batches, else >=2 grid steps (megacore),
    8-aligned, capped at block_b."""
    if batch <= _SUBLANE:
        return batch                       # block dim == array dim is legal
    half = _round_up((batch + 1) // 2, _SUBLANE)
    return max(_SUBLANE, min(block_b, half))


@functools.partial(jax.jit, static_argnames=("block_b",))
def net_forward(x, w1, b1, w2, b2, *, block_b=1024):
    """x: (B, n_states) f32.
       w1: (n_states, hidden)  b1: (1, hidden)
       w2: (hidden, n_actions) b2: (1, n_actions)   (kernel-ready, see init_params)."""
    B, n_states = x.shape
    hidden = w1.shape[1]
    n_actions = w2.shape[1]

    tb = _pick_tb(B, block_b)
    grid = (pl.cdiv(B, tb),)

    return pl.pallas_call(
        _net_kernel,
        out_shape=jax.ShapeDtypeStruct((B, n_actions), x.dtype),
        grid=grid,
        in_specs=[
            # x: one batch tile per grid step (double-buffered by Pallas).
            pl.BlockSpec((tb, n_states), lambda i: (i, 0)),
            # Weights / biases: constant block index -> VMEM-resident.
            pl.BlockSpec((n_states, hidden), lambda i: (0, 0)),
            pl.BlockSpec((1, hidden), lambda i: (0, 0)),
            pl.BlockSpec((hidden, n_actions), lambda i: (0, 0)),
            pl.BlockSpec((1, n_actions), lambda i: (0, 0)),
        ],
        # Unpadded, exact-width output: ragged last block's OOB rows are
        # masked on store, so no wrapper-side slice is needed.
        out_specs=pl.BlockSpec((tb, n_actions), lambda i: (i, 0)),
        compiler_params=pltpu.CompilerParams(
            # Batch steps are independent -> shard across v7x's 2 TCs.
            dimension_semantics=("parallel",)),
    )(x, w1, b1, w2, b2)


def init_params(key, n_states, n_actions, hidden=10):
    """Mirrors Net.__init__: weights ~ N(0, 0.1);
       biases ~ U(-1/sqrt(fan_in), 1/sqrt(fan_in)) (PyTorch Linear default).
       Returns parameters already in kernel-ready layout (weights transposed to
       (in, out), biases as (1, out) rows) so net_forward does no per-call prep."""
    k1, k2, k3, k4 = jax.random.split(key, 4)
    w1 = 0.1 * jax.random.normal(k1, (n_states, hidden), jnp.float32)   # fc1.weight.T
    bound1 = 1.0 / jnp.sqrt(n_states)
    b1 = jax.random.uniform(k2, (1, hidden), jnp.float32, -bound1, bound1)
    w2 = 0.1 * jax.random.normal(k3, (hidden, n_actions), jnp.float32)  # out.weight.T
    bound2 = 1.0 / jnp.sqrt(hidden)
    b2 = jax.random.uniform(k4, (1, n_actions), jnp.float32, -bound2, bound2)
    return w1, b1, w2, b2


def _ref_forward(x, w1, b1, w2, b2):
    return jnp.maximum(x @ w1 + b1, 0.0) @ w2 + b2


if __name__ == "__main__":
    key = jax.random.PRNGKey(0)
    kx1, kx2, kp = jax.random.split(key, 3)

    n_states, n_actions = 4, 2          # CartPole-ish DQN shapes

    w1, b1, w2, b2 = init_params(kp, n_states, n_actions)

    # Case 1: replay-minibatch-sized batch -> 2 grid steps (megacore-friendly).
    B1 = 256
    x1 = jax.random.normal(kx1, (B1, n_states), jnp.float32)
    out1 = jax.block_until_ready(net_forward(x1, w1, b1, w2, b2))
    ref1 = _ref_forward(x1, w1, b1, w2, b2)
    assert out1.shape == (B1, n_actions)
    assert jnp.allclose(out1, ref1, atol=1e-5, rtol=1e-5)

    # Case 2: tiny ragged batch (choose_action-style) -> single full-extent block.
    B2 = 5
    x2 = jax.random.normal(kx2, (B2, n_states), jnp.float32)
    out2 = jax.block_until_ready(net_forward(x2, w1, b1, w2, b2))
    ref2 = _ref_forward(x2, w1, b1, w2, b2)
    assert out2.shape == (B2, n_actions)
    assert jnp.allclose(out2, ref2, atol=1e-5, rtol=1e-5)

    # Case 3: batch not a multiple of the 8-row tile -> ragged last grid block
    # exercises Pallas' masked OOB writeback (no wrapper pad/slice).
    B3 = 37
    x3 = jax.random.normal(jax.random.PRNGKey(3), (B3, n_states), jnp.float32)
    out3 = jax.block_until_ready(net_forward(x3, w1, b1, w2, b2))
    ref3 = _ref_forward(x3, w1, b1, w2, b2)
    assert out3.shape == (B3, n_actions)
    assert jnp.allclose(out3, ref3, atol=1e-5, rtol=1e-5)

    print("KERNEL_OK")
</pallas_src>

<mosaic_0001>
module attributes {stable_mosaic.version = 11 : i64} {
  func.func @_net_kernel(%arg0: i32, %arg1: memref<128x4xf32, #tpu.memory_space<vmem>>, %arg2: memref<4x10xf32, #tpu.memory_space<vmem>>, %arg3: memref<1x10xf32, #tpu.memory_space<vmem>>, %arg4: memref<10x2xf32, #tpu.memory_space<vmem>>, %arg5: memref<1x2xf32, #tpu.memory_space<vmem>>, %arg6: memref<128x2xf32, #tpu.memory_space<vmem>>) attributes {dimension_semantics = [#tpu.dimension_semantics<parallel>], iteration_bounds = array<i64: 2>, scalar_prefetch = 0 : i64, scratch_operands = 0 : i64, tpu.core_type = #tpu.core_type<tc>, window_params = [{transform_indices = @transform_0, window_bounds = array<i64: 128, 4>}, {pipeline_mode = #tpu.pipeline_mode<synchronous>, transform_indices = @transform_1, window_bounds = array<i64: 4, 10>}, {pipeline_mode = #tpu.pipeline_mode<synchronous>, transform_indices = @transform_2, window_bounds = array<i64: 1, 10>}, {pipeline_mode = #tpu.pipeline_mode<synchronous>, transform_indices = @transform_3, window_bounds = array<i64: 10, 2>}, {pipeline_mode = #tpu.pipeline_mode<synchronous>, transform_indices = @transform_4, window_bounds = array<i64: 1, 2>}, {transform_indices = @transform_5, window_bounds = array<i64: 128, 2>}]} {
    %c0 = arith.constant 0 : index
    %c0_0 = arith.constant 0 : index
    %0 = vector.load %arg1[%c0, %c0_0] : memref<128x4xf32, #tpu.memory_space<vmem>>, vector<128x4xf32>
    %c0_1 = arith.constant 0 : index
    %c0_2 = arith.constant 0 : index
    %1 = vector.load %arg2[%c0_1, %c0_2] : memref<4x10xf32, #tpu.memory_space<vmem>>, vector<4x10xf32>
    %cst = arith.constant dense<0.000000e+00> : vector<128x10xf32>
    %2 = tpu.matmul %0, %1, %cst {dimension_numbers = #tpu.dot_dimension_numbers<[1], [0], [0], [1], [0, 0, 1, 1], [], []>} : vector<128x4xf32>, vector<4x10xf32>, vector<128x10xf32> -> vector<128x10xf32>
    %c0_3 = arith.constant 0 : index
    %c0_4 = arith.constant 0 : index
    %3 = vector.load %arg3[%c0_3, %c0_4] : memref<1x10xf32, #tpu.memory_space<vmem>>, vector<1x10xf32>
    %4 = vector.broadcast %3 : vector<1x10xf32> to vector<128x10xf32>
    %5 = arith.addf %2, %4 : vector<128x10xf32>
    %cst_5 = arith.constant 0.000000e+00 : f32
    %6 = vector.broadcast %cst_5 : f32 to vector<128x10xf32>
    %7 = arith.maximumf %5, %6 : vector<128x10xf32>
    %c0_6 = arith.constant 0 : index
    %c0_7 = arith.constant 0 : index
    %8 = vector.load %arg4[%c0_6, %c0_7] : memref<10x2xf32, #tpu.memory_space<vmem>>, vector<10x2xf32>
    %cst_8 = arith.constant dense<0.000000e+00> : vector<128x2xf32>
    %9 = tpu.matmul %7, %8, %cst_8 {dimension_numbers = #tpu.dot_dimension_numbers<[1], [0], [0], [1], [0, 0, 1, 1], [], []>} : vector<128x10xf32>, vector<10x2xf32>, vector<128x2xf32> -> vector<128x2xf32>
    %c0_9 = arith.constant 0 : index
    %c0_10 = arith.constant 0 : index
    %10 = vector.load %arg5[%c0_9, %c0_10] : memref<1x2xf32, #tpu.memory_space<vmem>>, vector<1x2xf32>
    %11 = vector.broadcast %10 : vector<1x2xf32> to vector<128x2xf32>
    %12 = arith.addf %9, %11 : vector<128x2xf32>
    %c0_11 = arith.constant 0 : index
    %c0_12 = arith.constant 0 : index
    %13 = vector.load %arg6[%c0_11, %c0_12] : memref<128x2xf32, #tpu.memory_space<vmem>>, vector<128x2xf32>
    tpu.vector_store %arg6[%c0_11, %c0_12], %12 {strides = array<i32>} : memref<128x2xf32, #tpu.memory_space<vmem>>, vector<128x2xf32>,
    return
  }
  func.func @transform_0(%arg0: i32) -> (i32, i32) {
    %c0_i32 = arith.constant 0 : i32
    %c0_i32_0 = arith.constant 0 : i32
    return %arg0, %c0_i32 : i32, i32
  }
  func.func @transform_1(%arg0: i32) -> (i32, i32) {
    %c0_i32 = arith.constant 0 : i32
    %c0_i32_0 = arith.constant 0 : i32
    %c0_i32_1 = arith.constant 0 : i32
    return %c0_i32, %c0_i32_0 : i32, i32
  }
  func.func @transform_2(%arg0: i32) -> (i32, i32) {
    %c0_i32 = arith.constant 0 : i32
    %c0_i32_0 = arith.constant 0 : i32
    %c0_i32_1 = arith.constant 0 : i32
    return %c0_i32, %c0_i32_0 : i32, i32
  }
  func.func @transform_3(%arg0: i32) -> (i32, i32) {
    %c0_i32 = arith.constant 0 : i32
    %c0_i32_0 = arith.constant 0 : i32
    %c0_i32_1 = arith.constant 0 : i32
    return %c0_i32, %c0_i32_0 : i32, i32
  }
  func.func @transform_4(%arg0: i32) -> (i32, i32) {
    %c0_i32 = arith.constant 0 : i32
    %c0_i32_0 = arith.constant 0 : i32
    %c0_i32_1 = arith.constant 0 : i32
    return %c0_i32, %c0_i32_0 : i32, i32
  }
  func.func @transform_5(%arg0: i32) -> (i32, i32) {
    %c0_i32 = arith.constant 0 : i32
    %c0_i32_0 = arith.constant 0 : i32
    return %arg0, %c0_i32 : i32, i32
  }
}

</mosaic_0001>

<bundles_post_ra>
// kernel: net_forward.1
= control target key start
LH: loop header
LB: loop body
LE: loop exit
PB: predicated region body
PF: predicated region fallthrough
CT: control target
= control target key end

     0   :  { %s936_s18 = smov 0   ;;  %s1059_s0 = inlined_call_operand.vmem [shape: f32[256,4], index: 0, kind: input, shape index: {}]   ;;  %s1060_s1 = inlined_call_operand.vmem [shape: f32[4,10], index: 1, kind: input, shape index: {}]   ;;  %s1061_s2 = inlined_call_operand.vmem [shape: f32[1,10], index: 2, kind: input, shape index: {}]   ;;  %s1062_s3 = inlined_call_operand.vmem [shape: f32[10,2], index: 3, kind: input, shape index: {}]   ;;  %s1063_s4 = inlined_call_operand.vmem [shape: f32[1,2], index: 4, kind: input, shape index: {}]   ;;  %s1064_s5 = inlined_call_operand.vmem [shape: f32[256,2], index: 5, kind: output, shape index: {}]  }
   0x1 LB: > { %s746_s19 = sadd.s32 4294967295, %s903_s18   ;;  %p750_p0 = scmp.ge.s32.totalorder %s903_s18, 1  ;;  %s903_s18 = sphi %s936_s18, %s15_s18  }
   0x2   : > { %p188_p1 = scmp.lt.s32.totalorder %s903_s18, 3 }
   0x4   : > { %p189_p2 = pnand %p750_p0, %p188_p1 }
   0x5   : > { %v244_v0 = vld [vmem:[%s1060_s1] sm:$0xf] (!%p189_p2)  ;;  %vm301_vm0 = vcmask (!%p189_p2), 1043456   ;;  %s751_s22 = sshll.u32 (!%p189_p2), %s746_s19, 4  ;;  %vm252_vm1 = vcmask (!%p189_p2), 31744   ;;  %vm524_vm2 = vcmask (!%p189_p2), 1041408  }
   0x6   : > { %192 = sbr.rel (%p189_p2) target bundleno = 480 (0x1e0), region = 40  ;;  %828 = vmatprep.subr.msk.mxu0 (!%p189_p2), %vm301_vm0, %v244_v0  ;;  %p217_p3 = scmp.lt.s32.totalorder (!%p189_p2), %s751_s22, 31  ;;  %v466_v17 = vld [vmem:[%s1062_s3] sm:$0xff] (!%p189_p2)  ;;  %v467_v18 = vld [vmem:[%s1062_s3 + $0x8] sm:$0x3] (!%p189_p2)  ;;  %vm905_vm3 = vmmov (!%p189_p2), 1  }
   0x7   : > { %829 = vmatpush3.msk.msra.mxu0 (!%p189_p2), %vm301_vm0, %v244_v0  ;;  %v882_v19 = vpack.c.bf16 (!%p189_p2), %v467_v18, %v466_v17  ;;  %vm883_vm4 = vmpackc.low (!%p189_p2), %vm524_vm2, %vm905_vm3  ;;  %v755_v20 = vld [vmem:[%s1061_s2] ss:$0 sm:$0xff] (!%p189_p2)  ;;  %vm475_vm5 = vcmask (!%p189_p2), 80896   ;;  %vm673_vm6 = vcmask (!%p189_p2), 15360  }
   0x9   : > { %884 = vmatprep.subr.msk.bf16.mxu1 (!%p189_p2), %vm883_vm4, %v882_v19 }
   0xa   : > { %887 = vmatpush3.bf16.msk.msra.mxu1 (!%p189_p2), %vm883_vm4, %v882_v19 }
   0xd   : > { %s1066_s22 = smov (!%p217_p3, %s751_s22), 31 }
   0xe   : > { %s752_s23 = sshll.u32 %s1066_s22, 3 }
   0xf   : > { %s955_s26 = scalar_lea.vmem %s1059_s0, %s752_s23  ;;  %s1022_s12 = scalar_lea.vmem %s1064_s5, %s752_s23 }
  0x10   : > { %v228_v1 = vld [vmem:[%s955_s26] sm:$0xff]  ;;  %v229_v2 = vld [vmem:[%s955_s26 + $0x8] sm:$0xff]  ;;  %v230_v3 = vld [vmem:[%s955_s26 + $0x10] sm:$0xff] }
  0x11   : > { %830 = vmatprep.mubr.msk.f32.mxu0 %vm252_vm1, %v228_v1  ;;  %v231_v4 = vld [vmem:[%s955_s26 + $0x18] sm:$0xff]  ;;  %v232_v5 = vld [vmem:[%s955_s26 + $0x20] sm:$0xff]  ;;  %v233_v6 = vld [vmem:[%s955_s26 + $0x28] sm:$0xff] }
  0x12   : > { %831 = vmatmul.mubr.msk.f32.vlgmr.msra.gmra.mrb[0].mxu0 %vm252_vm1, %v229_v2  ;;  %v234_v7 = vld [vmem:[%s955_s26 + $0x30] sm:$0xff]  ;;  %v235_v8 = vld [vmem:[%s955_s26 + $0x38] sm:$0xff]  ;;  %v236_v9 = vld [vmem:[%s955_s26 + $0x40] sm:$0xff] }
  0x13   : > { %833 = vmatprep.mubr.msk.f32.mxu0 %vm252_vm1, %v230_v3  ;;  %v237_v10 = vld [vmem:[%s955_s26 + $0x48] sm:$0xff]  ;;  %v238_v11 = vld [vmem:[%s955_s26 + $0x50] sm:$0xff]  ;;  %v239_v12 = vld [vmem:[%s955_s26 + $0x58] sm:$0xff] }
  0x14   : > { %v240_v13 = vld [vmem:[%s955_s26 + $0x60] sm:$0xff]  ;;  %v241_v14 = vld [vmem:[%s955_s26 + $0x68] sm:$0xff]  ;;  %v242_v15 = vld [vmem:[%s955_s26 + $0x70] sm:$0xff] }
  0x15   : > { %v243_v16 = vld [vmem:[%s955_s26 + $0x78] sm:$0xff] }
  0x16   : > { %834 = vmatmul.mubr.msk.f32.gmra.mrb[2].mxu0 %vm252_vm1, %v231_v4 }
  0x17   : > { %836 = vmatprep.mubr.msk.f32.mxu0 %vm252_vm1, %v232_v5  ;;  %v773_v5 = vld [vmem:[%s1063_s4] ss:$0 sm:$0xff] }
  0x1a   : > { %837 = vmatmul.mubr.msk.f32.gmra.mrb[4].mxu0 %vm252_vm1, %v233_v6 }
  0x1b   : > { %839 = vmatprep.mubr.msk.f32.mxu0 %vm252_vm1, %v234_v7 }
  0x1e   : > { %840 = vmatmul.mubr.msk.f32.gmra.mrb[6].mxu0 %vm252_vm1, %v235_v8 }
  0x1f   : > { %842 = vmatprep.mubr.msk.f32.mxu0 %vm252_vm1, %v236_v9 }
  0x22   : > { %843 = vmatmul.mubr.msk.f32.gmra.mrb[8].mxu0 %vm252_vm1, %v237_v10 }
  0x23   : > { %845 = vmatprep.mubr.msk.f32.mxu0 %vm252_vm1, %v238_v11 }
  0x26   : > { %846 = vmatmul.mubr.msk.f32.gmra.mrb[10].mxu0 %vm252_vm1, %v239_v12 }
  0x27   : > { %848 = vmatprep.mubr.msk.f32.mxu0 %vm252_vm1, %v240_v13 }
  0x2a   : > { %849 = vmatmul.mubr.msk.f32.gmra.mrb[12].mxu0 %vm252_vm1, %v241_v14 }
  0x2b   : > { %851 = vmatprep.mubr.msk.f32.mxu0 %vm252_vm1, %v242_v15 }
  0x2e   : > { %852 = vmatmul.mubr.msk.f32.gmra.mrb[14].mxu0 %vm252_vm1, %v243_v16 }
  0xe5   : > { %v832_v21 = vpop.f32.mrb[0].mxu0 }
  0xe6   : > { %v377_v22 = vadd.f32 %v832_v21, %v755_v20  ;;  %v371_v23 = vpop.f32.mrb[1].mxu0 }
  0xe7   : > { %v372_v24 = vadd.f32 %v755_v20, %v371_v23 }
  0xe8   : > { %v451_v27 = vmax.f32 %v377_v22, 0.0 }
  0xe9   : > { %v450_v25 = vmax.f32 %v372_v24, 0.0  ;;  %v835_v26 = vpop.f32.mrb[2].mxu0 }
  0xea   : > { %v387_v28 = vadd.f32 %v835_v26, %v755_v20  ;;  %v381_v29 = vpop.f32.mrb[3].mxu0 }
  0xeb   : > { %v382_v30 = vadd.f32 %v755_v20, %v381_v29  ;;  %858 = vmatprep.mubr.msk.f32.mxu1 %vm475_vm5, %v450_v25 }
  0xec   : > { %859 = vmatmul.mubr.msk.f32.vlgmr.msra.gmra.mrb[0].mxu1 %vm475_vm5, %v451_v27  ;;  %v453_v33 = vmax.f32 %v387_v28, 0.0 }
  0xed   : > { %v452_v31 = vmax.f32 %v382_v30, 0.0  ;;  %v838_v32 = vpop.f32.mrb[4].mxu0 }
  0xee   : > { %v397_v34 = vadd.f32 %v838_v32, %v755_v20  ;;  %v391_v35 = vpop.f32.mrb[5].mxu0 }
  0xef   : > { %v392_v36 = vadd.f32 %v755_v20, %v391_v35  ;;  %861 = vmatprep.mubr.msk.f32.mxu1 %vm475_vm5, %v452_v31 }
  0xf0   : > { %862 = vmatmul.mubr.msk.f32.gmra.mrb[2].mxu1 %vm475_vm5, %v453_v33  ;;  %v455_v39 = vmax.f32 %v397_v34, 0.0 }
  0xf1   : > { %v454_v37 = vmax.f32 %v392_v36, 0.0  ;;  %v841_v38 = vpop.f32.mrb[6].mxu0 }
  0xf2   : > { %v407_v40 = vadd.f32 %v841_v38, %v755_v20  ;;  %v401_v41 = vpop.f32.mrb[7].mxu0 }
  0xf3   : > { %v402_v42 = vadd.f32 %v755_v20, %v401_v41  ;;  %864 = vmatprep.mubr.msk.f32.mxu1 %vm475_vm5, %v454_v37 }
  0xf4   : > { %865 = vmatmul.mubr.msk.f32.gmra.mrb[4].mxu1 %vm475_vm5, %v455_v39  ;;  %v457_v45 = vmax.f32 %v407_v40, 0.0 }
  0xf5   : > { %v456_v43 = vmax.f32 %v402_v42, 0.0  ;;  %v844_v44 = vpop.f32.mrb[8].mxu0 }
  0xf6   : > { %v417_v46 = vadd.f32 %v844_v44, %v755_v20  ;;  %v411_v47 = vpop.f32.mrb[9].mxu0 }
  0xf7   : > { %v412_v48 = vadd.f32 %v755_v20, %v411_v47  ;;  %867 = vmatprep.mubr.msk.f32.mxu1 %vm475_vm5, %v456_v43 }
  0xf8   : > { %868 = vmatmul.mubr.msk.f32.gmra.mrb[6].mxu1 %vm475_vm5, %v457_v45  ;;  %v459_v51 = vmax.f32 %v417_v46, 0.0 }
  0xf9   : > { %v458_v49 = vmax.f32 %v412_v48, 0.0  ;;  %v847_v50 = vpop.f32.mrb[10].mxu0 }
  0xfa   : > { %v427_v52 = vadd.f32 %v847_v50, %v755_v20  ;;  %v421_v53 = vpop.f32.mrb[11].mxu0 }
  0xfb   : > { %v422_v54 = vadd.f32 %v755_v20, %v421_v53  ;;  %870 = vmatprep.mubr.msk.f32.mxu1 %vm475_vm5, %v458_v49 }
  0xfc   : > { %871 = vmatmul.mubr.msk.f32.gmra.mrb[8].mxu1 %vm475_vm5, %v459_v51  ;;  %v461_v57 = vmax.f32 %v427_v52, 0.0 }
  0xfd   : > { %v460_v55 = vmax.f32 %v422_v54, 0.0  ;;  %v850_v56 = vpop.f32.mrb[12].mxu0 }
  0xfe   : > { %v437_v58 = vadd.f32 %v850_v56, %v755_v20  ;;  %v431_v59 = vpop.f32.mrb[13].mxu0 }
  0xff   : > { %v432_v60 = vadd.f32 %v755_v20, %v431_v59  ;;  %873 = vmatprep.mubr.msk.f32.mxu1 %vm475_vm5, %v460_v55 }
 0x100   : > { %874 = vmatmul.mubr.msk.f32.gmra.mrb[10].mxu1 %vm475_vm5, %v461_v57  ;;  %v463_v63 = vmax.f32 %v437_v58, 0.0 }
 0x101   : > { %v462_v61 = vmax.f32 %v432_v60, 0.0  ;;  %v853_v62 = vpop.f32.mrb[14].mxu0 }
 0x102   : > { %v447_v0 = vadd.f32 %v853_v62, %v755_v20  ;;  %v441_v1 = vpop.f32.mrb[15].mxu0 }
 0x103   : > { %v442_v2 = vadd.f32 %v755_v20, %v441_v1  ;;  %876 = vmatprep.mubr.msk.f32.mxu1 %vm475_vm5, %v462_v61 }
 0x104   : > { %877 = vmatmul.mubr.msk.f32.gmra.mrb[12].mxu1 %vm475_vm5, %v463_v63  ;;  %v465_v4 = vmax.f32 %v447_v0, 0.0 }
 0x105   : > { %v464_v3 = vmax.f32 %v442_v2, 0.0 }
 0x107   : > { %879 = vmatprep.mubr.msk.f32.mxu1 %vm475_vm5, %v464_v3 }
 0x108   : > { %880 = vmatmul.mubr.msk.f32.gmra.mrb[14].mxu1 %vm475_vm5, %v465_v4 }
 0x1bf   : > { %v860_v6 = vpop.f32.mrb[0].mxu1 }
 0x1c0   : > { %v600_v7 = vadd.f32 %v860_v6, %v773_v5  ;;  %v594_v8 = vpop.f32.mrb[1].mxu1 }
 0x1c1   : > { %v595_v9 = vadd.f32 %v773_v5, %v594_v8 }
 0x1c2   : > { %675 = vst.msk [vmem:[%s1022_s12 + $0x8] sm:$0xff] %vm673_vm6, %v600_v7 }
 0x1c3   : > { %674 = vst.msk [vmem:[%s1022_s12] sm:$0xff] %vm673_vm6, %v595_v9  ;;  %v863_v10 = vpop.f32.mrb[2].mxu1 }
 0x1c4   : > { %v610_v11 = vadd.f32 %v863_v10, %v773_v5  ;;  %v604_v12 = vpop.f32.mrb[3].mxu1 }
 0x1c5   : > { %v605_v13 = vadd.f32 %v773_v5, %v604_v12 }
 0x1c6   : > { %677 = vst.msk [vmem:[%s1022_s12 + $0x18] sm:$0xff] %vm673_vm6, %v610_v11 }
 0x1c7   : > { %676 = vst.msk [vmem:[%s1022_s12 + $0x10] sm:$0xff] %vm673_vm6, %v605_v13  ;;  %v866_v14 = vpop.f32.mrb[4].mxu1 }
 0x1c8   : > { %v620_v15 = vadd.f32 %v866_v14, %v773_v5  ;;  %v614_v16 = vpop.f32.mrb[5].mxu1 }
 0x1c9   : > { %v615_v17 = vadd.f32 %v773_v5, %v614_v16 }
 0x1ca   : > { %679 = vst.msk [vmem:[%s1022_s12 + $0x28] sm:$0xff] %vm673_vm6, %v620_v15 }
 0x1cb   : > { %678 = vst.msk [vmem:[%s1022_s12 + $0x20] sm:$0xff] %vm673_vm6, %v615_v17  ;;  %v869_v18 = vpop.f32.mrb[6].mxu1 }
 0x1cc   : > { %v630_v19 = vadd.f32 %v869_v18, %v773_v5  ;;  %v624_v20 = vpop.f32.mrb[7].mxu1 }
 0x1cd   : > { %v625_v21 = vadd.f32 %v773_v5, %v624_v20 }
 0x1ce   : > { %681 = vst.msk [vmem:[%s1022_s12 + $0x38] sm:$0xff] %vm673_vm6, %v630_v19 }
 0x1cf   : > { %680 = vst.msk [vmem:[%s1022_s12 + $0x30] sm:$0xff] %vm673_vm6, %v625_v21  ;;  %v872_v22 = vpop.f32.mrb[8].mxu1 }
 0x1d0   : > { %v640_v23 = vadd.f32 %v872_v22, %v773_v5  ;;  %v634_v24 = vpop.f32.mrb[9].mxu1 }
 0x1d1   : > { %v635_v25 = vadd.f32 %v773_v5, %v634_v24 }
 0x1d2   : > { %683 = vst.msk [vmem:[%s1022_s12 + $0x48] sm:$0xff] %vm673_vm6, %v640_v23 }
 0x1d3   : > { %682 = vst.msk [vmem:[%s1022_s12 + $0x40] sm:$0xff] %vm673_vm6, %v635_v25  ;;  %v875_v26 = vpop.f32.mrb[10].mxu1 }
 0x1d4   : > { %v650_v27 = vadd.f32 %v875_v26, %v773_v5  ;;  %v644_v28 = vpop.f32.mrb[11].mxu1 }
 0x1d5   : > { %v645_v29 = vadd.f32 %v773_v5, %v644_v28 }
 0x1d6   : > { %685 = vst.msk [vmem:[%s1022_s12 + $0x58] sm:$0xff] %vm673_vm6, %v650_v27 }
 0x1d7   : > { %684 = vst.msk [vmem:[%s1022_s12 + $0x50] sm:$0xff] %vm673_vm6, %v645_v29  ;;  %v878_v30 = vpop.f32.mrb[12].mxu1 }
 0x1d8   : > { %v660_v31 = vadd.f32 %v878_v30, %v773_v5  ;;  %v654_v32 = vpop.f32.mrb[13].mxu1 }
 0x1d9   : > { %v655_v33 = vadd.f32 %v773_v5, %v654_v32 }
 0x1da   : > { %687 = vst.msk [vmem:[%s1022_s12 + $0x68] sm:$0xff] %vm673_vm6, %v660_v31 }
 0x1db   : > { %686 = vst.msk [vmem:[%s1022_s12 + $0x60] sm:$0xff] %vm673_vm6, %v655_v33  ;;  %v881_v34 = vpop.f32.mrb[14].mxu1 }
 0x1dc   : > { %v670_v35 = vadd.f32 %v881_v34, %v773_v5  ;;  %v664_v36 = vpop.f32.mrb[15].mxu1 }
 0x1dd   : > { %v665_v37 = vadd.f32 %v773_v5, %v664_v36 }
 0x1de   : > { %689 = vst.msk [vmem:[%s1022_s12 + $0x78] sm:$0xff] %vm673_vm6, %v670_v35 }
 0x1df   : > { %688 = vst.msk [vmem:[%s1022_s12 + $0x70] sm:$0xff] %vm673_vm6, %v665_v37 }
 0x1e0 PF: > { %s15_s18 = sadd.s32 1, %s903_s18  }
 0x1e1   : > { %p12_p4 = scmp.ge.s32.totalorder %s15_s18, 4  }
 0x1e3   :  { %14 = sbr.rel (!%p12_p4) target bundleno = 1 (0x1), region = 70 }

</bundles_post_ra>
